<compile_context>
chip_gen: v6e
topology: v6e:2x2x1
jax: 0.10.0
libtpu: 0.0.40
codegen_flags: <defaults>
</compile_context>

<pallas_src>
import functools
import math

import jax
import jax.numpy as jnp
from jax.experimental import pallas as pl
from jax.experimental.pallas import tpu as pltpu


def _ru(x, m):
    return (x + m - 1) // m * m


_TK_CAP = 2560   # max K tile (multiple of 128)
_TN_CAP = 1280   # max N tile (multiple of 128)


def _k_tiles(k):
    """Padded K and the K tile (both multiples of 128, padding minimized)."""
    kp_min = _ru(k, 128)
    if kp_min <= 4096:
        return kp_min, kp_min
    best_kp, best_tk = None, None
    for tk in range(_TK_CAP, 255, -128):
        kp = _ru(k, tk)
        if best_kp is None or kp < best_kp:
            best_kp, best_tk = kp, tk
        if kp == kp_min:          # zero extra padding beyond 128-rounding
            break
    return best_kp, best_tk


def _n_tiles(n):
    """Padded N and the N tile (lane-dense multiples of 128, padding minimized)."""
    np_min = _ru(n, 128)
    if np_min <= 1536:
        return np_min, np_min
    best_np, best_tn = None, None
    for tn in range(_TN_CAP, 127, -128):
        np_ = _ru(n, tn)
        if best_np is None or np_ < best_np:
            best_np, best_tn = np_, tn
        if np_ == np_min:
            break
    return best_np, best_tn


def _m_pad(m):
    mp = _ru(m, 8)
    if mp > 256:
        mp = _ru(mp, 256)
    return mp


# ----------------------------- Pallas kernels -----------------------------
def _matmul_kernel(a_ref, b_ref, bias_ref, o_ref, acc_ref):
    @pl.when(pl.program_id(2) == 0)
    def _init():
        acc_ref[...] = jnp.zeros_like(acc_ref)

    acc_ref[...] += jnp.dot(a_ref[...], b_ref[...], preferred_element_type=jnp.float32)

    @pl.when(pl.program_id(2) == pl.num_programs(2) - 1)
    def _done():
        o_ref[...] = (acc_ref[...] + bias_ref[...]).astype(o_ref.dtype)


def _groupnorm_kernel(x_ref, g_ref, b_ref, o_ref, *, eps, silu):
    x = x_ref[...].astype(jnp.float32)
    mean = jnp.mean(x, axis=-1, keepdims=True)
    var = jnp.mean(jnp.square(x - mean), axis=-1, keepdims=True)
    y = (x - mean) * jax.lax.rsqrt(var + eps)
    y = y * g_ref[...] + b_ref[...]
    if silu:
        y = y * (1.0 / (1.0 + jnp.exp(-y)))     # fused SiLU (residual-block path)
    o_ref[...] = y.astype(o_ref.dtype)


def _layernorm_kernel(x_ref, g_ref, b_ref, o_ref, *, eps):
    x = x_ref[...].astype(jnp.float32)
    mean = jnp.mean(x, axis=-1, keepdims=True)
    var = jnp.mean(jnp.square(x - mean), axis=-1, keepdims=True)
    y = (x - mean) * jax.lax.rsqrt(var + eps)
    o_ref[...] = (y * g_ref[...] + b_ref[...]).astype(o_ref.dtype)


def _attention_kernel(q_ref, k_ref, v_ref, o_ref, *, scale):
    q = q_ref[...]
    k = k_ref[...]
    v = v_ref[...]
    # all heads at once: (H,S,D) x (H,L,D) -> (H,S,L)
    s = jax.lax.dot_general(q, k, (((2,), (2,)), ((0,), (0,))),
                            preferred_element_type=jnp.float32) * scale
    m = jnp.max(s, axis=-1, keepdims=True)
    e = jnp.exp(s - m)
    denom = jnp.sum(e, axis=-1, keepdims=True)
    p = (e * pl.reciprocal(denom, approx=True)).astype(v.dtype)
    o = jax.lax.dot_general(p, v, (((2,), (1,)), ((0,), (0,))),
                            preferred_element_type=jnp.float32)
    o_ref[...] = o.astype(o_ref.dtype)


# ----------------------------- jitted Pallas leaves -----------------------------
@jax.jit
def _mm_padded(a_p, b_p, bias_p):
    mp, kp = a_p.shape
    _, np_ = b_p.shape
    tm = mp if mp <= 256 else 256
    _, tk = _k_tiles(kp)
    _, tn = _n_tiles(np_)
    return pl.pallas_call(
        _matmul_kernel,
        out_shape=jax.ShapeDtypeStruct((mp, np_), jnp.bfloat16),
        grid=(mp // tm, np_ // tn, kp // tk),
        in_specs=[pl.BlockSpec((tm, tk), lambda i, j, kk: (i, kk)),
                  pl.BlockSpec((tk, tn), lambda i, j, kk: (kk, j)),
                  pl.BlockSpec((1, tn), lambda i, j, kk: (0, j))],
        out_specs=pl.BlockSpec((tm, tn), lambda i, j, kk: (i, j)),
        scratch_shapes=[pltpu.VMEM((tm, tn), jnp.float32)],
        compiler_params=pltpu.CompilerParams(
            dimension_semantics=("parallel", "parallel", "arbitrary"),
            vmem_limit_bytes=40 * 1024 * 1024),
    )(a_p, b_p, bias_p)


def matmul_bias(a, lin):
    """a @ W + b with pre-padded bf16 weights; returns bf16 (m, n)."""
    m, k = a.shape
    mp = _m_pad(m)
    kp = lin["wm"].shape[0]
    a = a.astype(jnp.bfloat16)
    if (mp, kp) != (m, k):
        a = jnp.pad(a, ((0, mp - m), (0, kp - k)))
    out = _mm_padded(a, lin["wm"], lin["bias"])
    if out.shape != (m, lin["n"]):
        out = out[:m, :lin["n"]]
    return out


@functools.partial(jax.jit, static_argnames=("num_groups", "eps", "silu"))
def group_norm(x, gamma, beta, num_groups=32, eps=1e-5, silu=False):
    n, c, h, w = x.shape
    g = num_groups
    cg = c // g
    hw = h * w
    rows = n * g
    xr = x.reshape(rows, cg * hw)
    grow = jnp.broadcast_to(gamma.reshape(g, cg, 1), (g, cg, hw)).reshape(g, cg * hw)
    brow = jnp.broadcast_to(beta.reshape(g, cg, 1), (g, cg, hw)).reshape(g, cg * hw)
    if n > 1:
        grow = jnp.tile(grow, (n, 1))
        brow = jnp.tile(brow, (n, 1))
    rb = rows if (rows <= 64 or rows % 8 != 0) else 8
    # TODO(synk): for production resolutions tile the row dim more finely (larger HW per row).
    out = pl.pallas_call(
        functools.partial(_groupnorm_kernel, eps=eps, silu=silu),
        out_shape=jax.ShapeDtypeStruct((rows, cg * hw), jnp.bfloat16),
        grid=(rows // rb,),
        in_specs=[pl.BlockSpec((rb, cg * hw), lambda i: (i, 0)),
                  pl.BlockSpec((rb, cg * hw), lambda i: (i, 0)),
                  pl.BlockSpec((rb, cg * hw), lambda i: (i, 0))],
        out_specs=pl.BlockSpec((rb, cg * hw), lambda i: (i, 0)),
        compiler_params=pltpu.CompilerParams(dimension_semantics=("parallel",)),
    )(xr, grow, brow)
    return out.reshape(n, c, h, w)


@functools.partial(jax.jit, static_argnames=("eps",))
def layer_norm(x, gamma, beta, eps=1e-5):
    n, s, c = x.shape
    xr = x.reshape(n * s, c)
    out = pl.pallas_call(
        functools.partial(_layernorm_kernel, eps=eps),
        out_shape=jax.ShapeDtypeStruct((n * s, c), jnp.bfloat16),
        grid=(1,),
        in_specs=[pl.BlockSpec((n * s, c), lambda i: (0, 0)),
                  pl.BlockSpec((1, c), lambda i: (0, 0)),
                  pl.BlockSpec((1, c), lambda i: (0, 0))],
        out_specs=pl.BlockSpec((n * s, c), lambda i: (0, 0)),
    )(xr, gamma.reshape(1, c), beta.reshape(1, c))
    return out.reshape(n, s, c)


@functools.partial(jax.jit, static_argnames=("n_heads",))
def multi_head_attention(q, k, v, n_heads):
    n, s, c = q.shape
    l = k.shape[1]
    d = c // n_heads

    def split_heads(t, tt):
        t = t.astype(jnp.bfloat16)
        return t.reshape(n, tt, n_heads, d).transpose(0, 2, 1, 3).reshape(n * n_heads, tt, d)

    qh, kh, vh = split_heads(q, s), split_heads(k, l), split_heads(v, l)
    scale = 1.0 / math.sqrt(d)
    out = pl.pallas_call(
        functools.partial(_attention_kernel, scale=scale),
        out_shape=jax.ShapeDtypeStruct((n * n_heads, s, d), jnp.bfloat16),
        grid=(1,),
        in_specs=[pl.BlockSpec((n * n_heads, s, d), lambda i: (0, 0, 0)),
                  pl.BlockSpec((n * n_heads, l, d), lambda i: (0, 0, 0)),
                  pl.BlockSpec((n * n_heads, l, d), lambda i: (0, 0, 0))],
        out_specs=pl.BlockSpec((n * n_heads, s, d), lambda i: (0, 0, 0)),
        compiler_params=pltpu.CompilerParams(dimension_semantics=("parallel",)),
    )(qh, kh, vh)
    return out.reshape(n, n_heads, s, d).transpose(0, 2, 1, 3).reshape(n, s, c)


# ----------------------------- JAX-glue wrappers -----------------------------
def conv2d(x, cp, stride=1):
    n, c, h, w = x.shape
    ksz = cp["ksz"]
    if ksz == 1:
        if stride != 1:
            x = x[:, :, ::stride, ::stride]
        _, _, oh, ow = x.shape
        a = x.transpose(0, 2, 3, 1).reshape(n * oh * ow, c)
    else:
        pad = (ksz - 1) // 2
        xp = jnp.pad(x, ((0, 0), (0, 0), (pad, pad), (pad, pad)))
        oh = (h + 2 * pad - ksz) // stride + 1
        ow = (w + 2 * pad - ksz) // stride + 1
        # TODO(synk): stream im2col via BlockSpec index_map (9 accumulating taps) for
        # production resolutions instead of materializing the patch matrix in HBM.
        cols = []
        for di in range(ksz):
            for dj in range(ksz):
                cols.append(xp[:, :, di:di + stride * oh:stride,
                               dj:dj + stride * ow:stride])
        patches = jnp.stack(cols, axis=2)                      # (N, C, K*K, OH, OW)
        a = patches.reshape(n, c * ksz * ksz, oh, ow).transpose(0, 2, 3, 1)
        a = a.reshape(n * oh * ow, c * ksz * ksz)
    out = matmul_bias(a, cp["mm"])
    return out.reshape(n, oh, ow, cp["mm"]["n"]).transpose(0, 3, 1, 2)


def linear(x, lp):
    shp = x.shape
    a = x.reshape(-1, shp[-1])
    out = matmul_bias(a, lp)
    return out.reshape(shp[:-1] + (lp["n"],))


# ----------------------------- parameter init -----------------------------
class KeyGen:
    def __init__(self, key):
        self.key = key
        self.i = 0

    def __call__(self):
        self.i += 1
        return jax.random.fold_in(self.key, self.i)


def _prep_matmul(w_t, b):
    """w_t: (K, N) -> padded bf16; b: (N,) -> padded f32 row."""
    k, n = w_t.shape
    kp, _ = _k_tiles(k)
    np_, _ = _n_tiles(n)
    wm = jnp.pad(w_t.astype(jnp.bfloat16), ((0, kp - k), (0, np_ - n)))
    bias = jnp.pad(b.astype(jnp.float32), (0, np_ - n)).reshape(1, np_)
    return {"wm": wm, "bias": bias, "n": n, "k": k}


def init_norm(c):
    return {"g": jnp.ones((c,), jnp.float32), "b": jnp.zeros((c,), jnp.float32)}


def init_conv(kg, in_c, out_c, k):
    std = 1.0 / math.sqrt(in_c * k * k)
    w = std * jax.random.normal(kg(), (out_c, in_c, k, k), jnp.bfloat16)
    b = 0.01 * jax.random.normal(kg(), (out_c,), jnp.float32)
    return {"mm": _prep_matmul(w.reshape(out_c, in_c * k * k).T, b), "ksz": k}


def init_linear(kg, in_f, out_f, bias=True):
    std = 1.0 / math.sqrt(in_f)
    w = std * jax.random.normal(kg(), (out_f, in_f), jnp.bfloat16)
    b = (0.01 * jax.random.normal(kg(), (out_f,), jnp.float32)
         if bias else jnp.zeros((out_f,), jnp.float32))   # bias-free layer == zero bias
    return _prep_matmul(w.T, b)


def init_residual_block(kg, in_c, out_c, n_time=1280):
    p = {"gn1": init_norm(in_c),
         "conv1": init_conv(kg, in_c, out_c, 3),
         "time": init_linear(kg, n_time, out_c),
         # groupnorm_merged exists in the reference __init__ but its forward result is
         # discarded (`merged - self.groupnorm_merged(merged)`), so it never affects output.
         "conv2": init_conv(kg, out_c, out_c, 3)}
    if in_c != out_c:
        p["res"] = init_conv(kg, in_c, out_c, 1)
    return p


def init_attention_block(kg, n_head, channels, d_context=768):
    return {"n_head": n_head,
            "gn": init_norm(channels),
            "conv_in": init_conv(kg, channels, channels, 1),
            "ln1": init_norm(channels),
            "attn1_in": init_linear(kg, channels, 3 * channels, bias=False),
            "attn1_out": init_linear(kg, channels, channels, bias=True),
            "ln2": init_norm(channels),
            "attn2_q": init_linear(kg, channels, channels, bias=False),
            "attn2_k": init_linear(kg, d_context, channels, bias=False),
            "attn2_v": init_linear(kg, d_context, channels, bias=False),
            "attn2_out": init_linear(kg, channels, channels, bias=True),
            "ln3": init_norm(channels),
            "geglu1": init_linear(kg, channels, 4 * channels * 2, bias=True),
            "geglu2": init_linear(kg, 4 * channels, channels, bias=True),
            "conv_out": init_conv(kg, channels, channels, 1)}


def init_unet(kg):
    def conv_layer(in_c, out_c, stride):
        return {"kind": "conv", "p": init_conv(kg, in_c, out_c, 3), "stride": stride}

    def res_layer(in_c, out_c):
        return {"kind": "res", "p": init_residual_block(kg, in_c, out_c)}

    def attn_layer(n_head, channels):
        return {"kind": "attn", "p": init_attention_block(kg, n_head, channels)}

    def up_layer(c):
        return {"kind": "up", "p": init_conv(kg, c, c, 3)}

    encoders = [
        [conv_layer(4, 320, 1)],
        [res_layer(320, 320), attn_layer(8, 320)],
        [res_layer(320, 320), attn_layer(8, 320)],   # canonical 12th encoder (see header note)
        [conv_layer(320, 320, 2)],
        [res_layer(320, 640), attn_layer(8, 640)],
        [res_layer(640, 640), attn_layer(8, 640)],
        [conv_layer(640, 640, 2)],
        [res_layer(640, 1280), attn_layer(8, 1280)],
        [res_layer(1280, 1280), attn_layer(8, 1280)],
        [conv_layer(1280, 1280, 2)],
        [res_layer(1280, 1280)],
        [res_layer(1280, 1280)],
    ]
    bottleneck = [res_layer(1280, 1280), attn_layer(8, 1280), res_layer(1280, 1280)]
    decoders = [
        [res_layer(2560, 1280)],
        [res_layer(2560, 1280)],
        [res_layer(2560, 1280), up_layer(1280)],
        [res_layer(2560, 1280), attn_layer(8, 1280)],
        [res_layer(2560, 1280), attn_layer(8, 1280)],
        [res_layer(1920, 1280), attn_layer(8, 1280), up_layer(1280)],
        [res_layer(1920, 640), attn_layer(8, 640)],
        [res_layer(1280, 640), attn_layer(8, 640)],
        [res_layer(960, 640), attn_layer(8, 640), up_layer(640)],
        [res_layer(960, 320), attn_layer(8, 320)],
        [res_layer(640, 320), attn_layer(8, 320)],
        [res_layer(640, 320), attn_layer(8, 320)],
    ]
    return {"encoders": encoders, "bottleneck": bottleneck, "decoders": decoders}


# ----------------------------- block forwards -----------------------------
def residual_block_forward(feature, time, p):
    residue = feature
    h = group_norm(feature, p["gn1"]["g"], p["gn1"]["b"], eps=1e-5, silu=True)  # SiLU fused
    h = conv2d(h, p["conv1"])
    t = linear(time, p["time"])                                # (1, OC)
    merged = h + t[:, :, None, None].astype(h.dtype)
    # reference: `merged - self.groupnorm_merged(merged)` (result discarded) -> skipped
    # TODO(synk): fuse the time-add + SiLU into the conv2 im2col prologue for large resolutions.
    merged = jax.nn.silu(merged)
    merged = conv2d(merged, p["conv2"])
    if "res" in p:
        residue = conv2d(residue, p["res"])
    return merged + residue.astype(merged.dtype)


def attention_block_forward(x, context, p):
    n_head = p["n_head"]
    residue_long = x
    h = group_norm(x, p["gn"]["g"], p["gn"]["b"], eps=1e-6, silu=False)
    h = conv2d(h, p["conv_in"])
    n, c, hh, ww = h.shape
    h = h.reshape(n, c, hh * ww).transpose(0, 2, 1)            # (N, S, C)
    residue_short = h
    h = layer_norm(h, p["ln1"]["g"], p["ln1"]["b"])
    qkv = linear(h, p["attn1_in"])
    q, k, v = jnp.split(qkv, 3, axis=-1)
    h = multi_head_attention(q, k, v, n_heads=n_head)
    h = linear(h, p["attn1_out"])
    h = h + residue_short
    residue_short = h
    h = layer_norm(h, p["ln2"]["g"], p["ln2"]["b"])
    q = linear(h, p["attn2_q"])
    k = linear(context, p["attn2_k"])
    v = linear(context, p["attn2_v"])
    h = multi_head_attention(q, k, v, n_heads=n_head)
    h = linear(h, p["attn2_out"])
    h = h + residue_short
    residue_short = h
    h = layer_norm(h, p["ln3"]["g"], p["ln3"]["b"])
    hg = linear(h, p["geglu1"])
    a, gate = jnp.split(hg, 2, axis=-1)
    h = a * jax.nn.gelu(gate, approximate=False)               # exact-erf GELU gate (JAX glue)
    h = linear(h, p["geglu2"])
    h = h + residue_short
    h = h.transpose(0, 2, 1).reshape(n, c, hh, ww)
    return conv2d(h, p["conv_out"]) + residue_long.astype(jnp.bfloat16)


def switch_sequential(x, context, time, layers):
    for layer in layers:
        kind = layer["kind"]
        if kind == "conv":
            x = conv2d(x, layer["p"], stride=layer["stride"])
        elif kind == "res":
            x = residual_block_forward(x, time, layer["p"])
        elif kind == "attn":
            x = attention_block_forward(x, context, layer["p"])
        elif kind == "up":
            # TODO(synk): fold nearest x2 upsample into the following conv's input DMA.
            x = jnp.repeat(jnp.repeat(x, 2, axis=2), 2, axis=3)
            x = conv2d(x, layer["p"])
    return x


def unet_forward(params, x, context, time):
    skips = []
    for layers in params["encoders"]:
        x = switch_sequential(x, context, time, layers)
        skips.append(x)
    x = switch_sequential(x, context, time, params["bottleneck"])
    for layers in params["decoders"]:
        x = jnp.concatenate([x, skips.pop()], axis=1)
        x = switch_sequential(x, context, time, layers)
    return x


# ----------------------------- main -----------------------------
if __name__ == "__main__":
    root = jax.random.PRNGKey(0)
    kg = KeyGen(root)
    params = init_unet(kg)

    ikey = jax.random.fold_in(root, 10_000)
    x = jax.random.normal(jax.random.fold_in(ikey, 0), (1, 4, 8, 8), jnp.float32)
    context = jax.random.normal(jax.random.fold_in(ikey, 1), (1, 8, 768), jnp.float32)
    time = jax.random.normal(jax.random.fold_in(ikey, 2), (1, 1280), jnp.float32)

    out = unet_forward(params, x, context, time)
    out = jax.block_until_ready(out).astype(jnp.float32)
    assert out.shape == (1, 320, 8, 8), out.shape
    assert bool(jnp.all(jnp.isfinite(out)))
    print("KERNEL_OK")
</pallas_src>

<mosaic_0001>
module attributes {stable_mosaic.version = 11 : i64} {
  func.func @_matmul_kernel(%arg0: i32, %arg1: i32, %arg2: i32, %arg3: memref<64x128xbf16, #tpu.memory_space<vmem>>, %arg4: memref<128x384xbf16, #tpu.memory_space<vmem>>, %arg5: memref<1x384xf32, #tpu.memory_space<vmem>>, %arg6: memref<64x384xbf16, #tpu.memory_space<vmem>>, %arg7: memref<64x384xf32, #tpu.memory_space<vmem>>) attributes {dimension_semantics = [#tpu.dimension_semantics<parallel>, #tpu.dimension_semantics<parallel>, #tpu.dimension_semantics<arbitrary>], iteration_bounds = array<i64: 1, 1, 1>, scalar_prefetch = 0 : i64, scratch_operands = 1 : i64, tpu.core_type = #tpu.core_type<tc>, window_params = [{transform_indices = @transform_0, window_bounds = array<i64: 64, 128>}, {transform_indices = @transform_1, window_bounds = array<i64: 128, 384>}, {transform_indices = @transform_2, window_bounds = array<i64: 1, 384>}, {transform_indices = @transform_3, window_bounds = array<i64: 64, 384>}]} {
    %c0_i32 = arith.constant 0 : i32
    %0 = arith.cmpi eq, %arg2, %c0_i32 : i32
    %1 = arith.extui %0 : i1 to i32
    %c0_i32_0 = arith.constant 0 : i32
    %2 = arith.cmpi ne, %1, %c0_i32_0 : i32
    scf.if %2 {
      %cst_10 = arith.constant 0.000000e+00 : f32
      %12 = vector.broadcast %cst_10 : f32 to vector<64x384xf32>
      %c0_11 = arith.constant 0 : index
      %c0_12 = arith.constant 0 : index
      %13 = vector.load %arg7[%c0_11, %c0_12] : memref<64x384xf32, #tpu.memory_space<vmem>>, vector<64x384xf32>
      tpu.vector_store %arg7[%c0_11, %c0_12], %12 {strides = array<i32>} : memref<64x384xf32, #tpu.memory_space<vmem>>, vector<64x384xf32>,
    } else {
    }
    %c0 = arith.constant 0 : index
    %c0_1 = arith.constant 0 : index
    %3 = vector.load %arg7[%c0, %c0_1] : memref<64x384xf32, #tpu.memory_space<vmem>>, vector<64x384xf32>
    %c0_2 = arith.constant 0 : index
    %c0_3 = arith.constant 0 : index
    %4 = vector.load %arg3[%c0_2, %c0_3] : memref<64x128xbf16, #tpu.memory_space<vmem>>, vector<64x128xbf16>
    %c0_4 = arith.constant 0 : index
    %c0_5 = arith.constant 0 : index
    %5 = vector.load %arg4[%c0_4, %c0_5] : memref<128x384xbf16, #tpu.memory_space<vmem>>, vector<128x384xbf16>
    %cst = arith.constant dense<0.000000e+00> : vector<64x384xf32>
    %6 = tpu.matmul %4, %5, %cst {dimension_numbers = #tpu.dot_dimension_numbers<[1], [0], [0], [1], [0, 0, 1, 1], [], []>} : vector<64x128xbf16>, vector<128x384xbf16>, vector<64x384xf32> -> vector<64x384xf32>
    %7 = arith.addf %3, %6 : vector<64x384xf32>
    %c0_6 = arith.constant 0 : index
    %c0_7 = arith.constant 0 : index
    %8 = vector.load %arg7[%c0_6, %c0_7] : memref<64x384xf32, #tpu.memory_space<vmem>>, vector<64x384xf32>
    tpu.vector_store %arg7[%c0_6, %c0_7], %7 {strides = array<i32>} : memref<64x384xf32, #tpu.memory_space<vmem>>, vector<64x384xf32>,
    %c0_i32_8 = arith.constant 0 : i32
    %9 = arith.cmpi eq, %arg2, %c0_i32_8 : i32
    %10 = arith.extui %9 : i1 to i32
    %c0_i32_9 = arith.constant 0 : i32
    %11 = arith.cmpi ne, %10, %c0_i32_9 : i32
    scf.if %11 {
      %c0_10 = arith.constant 0 : index
      %c0_11 = arith.constant 0 : index
      %12 = vector.load %arg7[%c0_10, %c0_11] : memref<64x384xf32, #tpu.memory_space<vmem>>, vector<64x384xf32>
      %c0_12 = arith.constant 0 : index
      %c0_13 = arith.constant 0 : index
      %13 = vector.load %arg5[%c0_12, %c0_13] : memref<1x384xf32, #tpu.memory_space<vmem>>, vector<1x384xf32>
      %14 = vector.broadcast %13 : vector<1x384xf32> to vector<64x384xf32>
      %15 = arith.addf %12, %14 : vector<64x384xf32>
      %16 = arith.truncf %15 : vector<64x384xf32> to vector<64x384xbf16>
      %c0_14 = arith.constant 0 : index
      %c0_15 = arith.constant 0 : index
      %17 = vector.load %arg6[%c0_14, %c0_15] : memref<64x384xbf16, #tpu.memory_space<vmem>>, vector<64x384xbf16>
      tpu.vector_store %arg6[%c0_14, %c0_15], %16 {strides = array<i32>} : memref<64x384xbf16, #tpu.memory_space<vmem>>, vector<64x384xbf16>,
    } else {
    }
    return
  }
  func.func @transform_0(%arg0: i32, %arg1: i32, %arg2: i32) -> (i32, i32) {
    %c0_i32 = arith.constant 0 : i32
    return %arg0, %arg2 : i32, i32
  }
  func.func @transform_1(%arg0: i32, %arg1: i32, %arg2: i32) -> (i32, i32) {
    %c0_i32 = arith.constant 0 : i32
    return %arg2, %arg1 : i32, i32
  }
  func.func @transform_2(%arg0: i32, %arg1: i32, %arg2: i32) -> (i32, i32) {
    %c0_i32 = arith.constant 0 : i32
    %c0_i32_0 = arith.constant 0 : i32
    return %c0_i32, %arg1 : i32, i32
  }
  func.func @transform_3(%arg0: i32, %arg1: i32, %arg2: i32) -> (i32, i32) {
    %c0_i32 = arith.constant 0 : i32
    return %arg0, %arg1 : i32, i32
  }
}

</mosaic_0001>

<bundles_post_ra>
// kernel: _mm_padded.1
= control target key start
LH: loop header
LB: loop body
LE: loop exit
PB: predicated region body
PF: predicated region fallthrough
CT: control target
= control target key end

     0   :  { %8 = vsyncpa [#allocation4], 0  ;;  %s932_s0 = inlined_call_operand.hbm [shape: bf16[64,128], index: 0, kind: input, shape index: {}]   ;;  %s933_s1 = inlined_call_operand.hbm [shape: bf16[128,384], index: 1, kind: input, shape index: {}]   ;;  %s934_s2 = inlined_call_operand.vmem [shape: f32[1,384], index: 2, kind: input, shape index: {}]   ;;  %s935_s3 = inlined_call_operand.hbm [shape: bf16[64,384], index: 3, kind: output, shape index: {}]  }
   0x1   :  { %9 = vsyncpa [#allocation7], 0 }
   0x2   :  { %10 = vsyncpa [#allocation5], 0  ;;  %s862_s12 = smov [#allocation3]  }
   0x3   :  { %s16_s13 = sshll.u32 %s862_s12, 4  ;;  %s17_s13 = int_to_ptr.vmem [resolvable:$true] %s16_s13 }
   0x4   :  { %s804_s14 = scalar_lea.vmem %s17_s13, 512  ;;  %p809_p1 = scmp.lt.s32.totalorder %s17_s13, %s17_s13 }
   0x5   :  { %p805_p0 = scmp.ne.s32.totalorder %s17_s13, %s804_s14  ;;  %p810_p2 = scmp.lt.s32.totalorder %s804_s14, %s804_s14 }
   0x7   :  { %p811_p3 = por %p810_p2, %p809_p1 }
   0x9   :  { %p812_p4 = pnand %p811_p3, %p805_p0 }
   0xb   :  { %815 = shalt.err (!%p812_p4)
}
   0xc   :  { %s863_s15 = smov 64   ;;  %s864_s16 = smov 4  }
   0xd   :  { %22 = dma.hbm_to_vmem [thread:$0]  %s932_s0, 512, %s17_s13, [#allocation4], %s863_s15, %s863_s15, %s864_s16  }
   0xe   :  { %s865_s19 = smov [#allocation6]  }
   0xf   :  { %s28_s20 = sshll.u32 %s865_s19, 4  ;;  %s29_s20 = int_to_ptr.vmem [resolvable:$true] %s28_s20 }
  0x10   :  { %s824_s21 = scalar_lea.vmem %s29_s20, 3072  ;;  %p829_p6 = scmp.lt.s32.totalorder %s29_s20, %s29_s20 }
  0x11   :  { %p825_p5 = scmp.ne.s32.totalorder %s29_s20, %s824_s21  ;;  %p830_p7 = scmp.lt.s32.totalorder %s824_s21, %s824_s21 }
  0x13   :  { %p831_p8 = por %p830_p7, %p829_p6 }
  0x15   :  { %p832_p9 = pnand %p831_p8, %p825_p5 }
  0x17   :  { %835 = shalt.err (!%p832_p9)
}
  0x18   :  { %s866_s22 = smov 192   ;;  %s867_s23 = smov 12  }
  0x19   :  { %34 = dma.hbm_to_vmem [thread:$0]  %s933_s1, 3072, %s29_s20, [#allocation7], %s866_s22, %s866_s22, %s867_s23  }
  0x1a   :  { %856 = dma.done.wait [#allocation4], 512  }
  0x1b   :  { %857 = vsyncadd [#allocation4], 4294966784 }
  0x1c   :  { %858 = dma.done.wait [#allocation7], 3072  }
  0x1d   :  { %859 = vsyncadd [#allocation7], 4294964224  ;;  %v868_v0 = vmov 0   ;;  %v760_v1 = vld [vmem:[#allocation6 + $0xac] ss:$12 sps:$4 sm:$0xff]   ;;  %v790_v19 = vld [vmem:[#allocation3] sm:$0xff]   ;;  %v503_v29 = vlaneseq }
  0x1e   :  { %320 = vmatprep.mubr.bf16.mxu0 %v868_v0  ;;  %v762_v2 = vld [vmem:[#allocation6 + $0xa8] ss:$12 sps:$4 sm:$0xff]   ;;  %288 = vmatprep.subr.bf16.mxu0 %v760_v1  ;;  %v765_v4 = vld [vmem:[#allocation6 + $0x90] ss:$12 sps:$4 sm:$0xff]   ;;  %v768_v7 = vld [vmem:[#allocation6 + $0x78] ss:$12 sps:$4 sm:$0xff]  }
  0x1f   :  { %v763_v3 = vld [vmem:[#allocation6 + $0x94] ss:$12 sps:$4 sm:$0xff]   ;;  %289 = vmatpush1.bf16.msra.mxu0 %v762_v2  ;;  %v766_v5 = vld [vmem:[#allocation6 + $0x7c] ss:$12 sps:$4 sm:$0xff]   ;;  %v773_v8 = vld [vmem:[#allocation6 + $0x98] ss:$12 sps:$4 sm:$0xff]   ;;  %744 = vmatprep.mubr.bf16.mxu1 %v790_v19 }
  0x20   :  { %290 = vmatprep.subr.bf16.mxu0 %v763_v3  ;;  %v769_v6 = vld [vmem:[#allocation6 + $0xb0] ss:$12 sps:$4 sm:$0xff]   ;;  %v777_v10 = vld [vmem:[#allocation6 + $0x80] ss:$12 sps:$4 sm:$0xff]   ;;  %v781_v13 = vld [vmem:[#allocation6 + $0x68] ss:$12 sps:$4 sm:$0xff]  }
  0x21   :  { %728 = vmatprep.subr.bf16.mxu1 %v769_v6  ;;  %v770_v9 = vld [vmem:[#allocation6 + $0x64] ss:$12 sps:$4 sm:$0xff]   ;;  %v772_v11 = vld [vmem:[#allocation6 + $0x60] ss:$12 sps:$4 sm:$0xff]   ;;  %v776_v14 = vld [vmem:[#allocation6 + $0x48] ss:$12 sps:$4 sm:$0xff]  }
  0x22   :  { %729 = vmatpush3.bf16.msra.mxu1 %v769_v6  ;;  %v774_v12 = vld [vmem:[#allocation6 + $0x4c] ss:$12 sps:$4 sm:$0xff]   ;;  %v778_v15 = vld [vmem:[#allocation6 + $0x34] ss:$12 sps:$4 sm:$0xff]   ;;  %v785_v16 = vld [vmem:[#allocation6 + $0x50] ss:$12 sps:$4 sm:$0xff]  }
  0x23   :  { %291 = vmatpush1.bf16.msra.mxu0 %v765_v4  ;;  %730 = vmatprep.subr.bf16.mxu1 %v773_v8  ;;  %v780_v17 = vld [vmem:[#allocation6 + $0x30] ss:$12 sps:$4 sm:$0xff]   ;;  %v789_v20 = vld [vmem:[#allocation6 + $0x38] ss:$12 sps:$4 sm:$0xff]   ;;  %v791_v23 = vld [vmem:[#allocation6 + $0x20] ss:$12 sps:$4 sm:$0xff]  }
  0x24   :  { %292 = vmatprep.subr.bf16.mxu0 %v766_v5  ;;  %v782_v18 = vld [vmem:[#allocation6 + $0x1c] ss:$12 sps:$4 sm:$0xff]   ;;  %v784_v21 = vld [vmem:[#allocation6 + $0x18] ss:$12 sps:$4 sm:$0xff]   ;;  %v788_v24 = vld [vmem:[#allocation6] ss:$12 sps:$4 sm:$0xff]  }
  0x25   :  { %v786_v22 = vld [vmem:[#allocation6 + $0x4] ss:$12 sps:$4 sm:$0xff]   ;;  %v792_v25 = vld [vmem:[#allocation6 + $0x8] ss:$12 sps:$4 sm:$0xff]   ;;  %v795_v28 = vld [vmem:[#allocation3 + $0x18] sm:$0xff]   ;;  %v504_v30 = vshrl.u32 %v503_v29, 7 }
  0x26   :  { %731 = vmatpush3.bf16.msra.mxu1 %v773_v8  ;;  %v794_v26 = vld [vmem:[#allocation3 + $0x10] sm:$0xff]   ;;  %v793_v27 = vld [vmem:[#allocation3 + $0x8] sm:$0xff]   ;;  %v501_v33 = vld [vmem:[%s934_s2] sm:$0x7]  ;;  %s869_s2 = smov [#allocation8]  }
  0x27   :  { %293 = vmatpush1.bf16.msra.mxu0 %v768_v7  ;;  %732 = vmatprep.subr.bf16.mxu1 %v777_v10  ;;  %v505_v31 = vsub.s32 0, %v504_v30  ;;  %v509_v32 = vsub.s32 1, %v504_v30  ;;  %v513_v34 = vsub.s32 2, %v504_v30  ;;  %s643_s26 = sshll.u32 %s869_s2, 4  ;;  %s644_s26 = int_to_ptr.vmem [resolvable:$true] %s643_s26 }
  0x28   :  { %294 = vmatprep.subr.bf16.mxu0 %v770_v9  ;;  %s836_s27 = scalar_lea.vmem %s644_s26, 1536  ;;  %p841_p11 = scmp.lt.s32.totalorder %s644_s26, %s644_s26 }
  0x29   :  { %v906_v35 = vrot.slane %v501_v33, %v505_v31  ;;  %v908_v36 = vrot.slane %v501_v33, %v509_v32  ;;  %v514_v38 = vrot.slane %v501_v33, %v513_v34  ;;  %p837_p10 = scmp.ne.s32.totalorder %s644_s26, %s836_s27  ;;  %p842_p12 = scmp.lt.s32.totalorder %s836_s27, %s836_s27 }
  0x2a   :  { %733 = vmatpush3.bf16.msra.mxu1 %v777_v10 }
  0x2b   :  { %295 = vmatpush1.bf16.msra.mxu0 %v772_v11  ;;  %734 = vmatprep.subr.bf16.mxu1 %v781_v13  ;;  %p843_p13 = por %p842_p12, %p841_p11 }
  0x2c   :  { %296 = vmatprep.subr.bf16.mxu0 %v774_v12 }
  0x2d   :  { %p844_p0 = pnand %p843_p13, %p837_p10 }
  0x2e   :  { %735 = vmatpush3.bf16.msra.mxu1 %v781_v13 }
  0x2f   :  { %297 = vmatpush1.bf16.msra.mxu0 %v776_v14  ;;  %736 = vmatprep.subr.bf16.mxu1 %v785_v16 }
  0x30   :  { %298 = vmatprep.subr.bf16.mxu0 %v778_v15 }
  0x32   :  { %737 = vmatpush3.bf16.msra.mxu1 %v785_v16 }
  0x33   :  { %299 = vmatpush1.bf16.msra.mxu0 %v780_v17  ;;  %738 = vmatprep.subr.bf16.mxu1 %v789_v20 }
  0x34   :  { %300 = vmatprep.subr.bf16.mxu0 %v782_v18 }
  0x36   :  { %739 = vmatpush3.bf16.msra.mxu1 %v789_v20 }
  0x37   :  { %301 = vmatpush1.bf16.msra.mxu0 %v784_v21  ;;  %740 = vmatprep.subr.bf16.mxu1 %v791_v23 }
  0x38   :  { %302 = vmatprep.subr.bf16.mxu0 %v786_v22 }
  0x3a   :  { %741 = vmatpush3.bf16.msra.mxu1 %v791_v23 }
  0x3b   :  { %303 = vmatpush1.bf16.msra.mxu0 %v788_v24  ;;  %742 = vmatprep.subr.bf16.mxu1 %v792_v25 }
  0x3e   :  { %321 = vmatmul.mubr.bf16.vlgmr.msra.gmra.mxu0 %v790_v19  ;;  %743 = vmatpush3.bf16.msra.mxu1 %v792_v25 }
  0x3f   :  { %330 = vmatprep.mubr.bf16.mxu0 %v868_v0 }
  0x41   :  { %745 = vmatmul.mubr.bf16.vlgmr.msra.gmra.mxu1 %v793_v27 }
  0x42   :  { %748 = vmatprep.mubr.bf16.mxu1 %v794_v26 }
  0x46   :  { %331 = vmatmul.mubr.bf16.gmra.mxu0 %v793_v27 }
  0x47   :  { %340 = vmatprep.mubr.bf16.mxu0 %v868_v0 }
  0x49   :  { %749 = vmatmul.mubr.bf16.gmra.mxu1 %v795_v28 }
  0x4e   :  { %341 = vmatmul.mubr.bf16.gmra.mxu0 %v794_v26 }
  0x4f   :  { %350 = vmatprep.mubr.bf16.mxu0 %v868_v0 }
  0x56   :  { %351 = vmatmul.mubr.bf16.gmra.mxu0 %v795_v28 }
  0xfe   :  { %v322_v37 = vpop.f32.mrf.mxu0 }
  0xff   :  { %v518_v40 = vadd.f32 %v906_v35, %v322_v37 }
 0x100   :  { %v324_v39 = vpop.f32.mrf.mxu0 }
 0x101   :  { %v519_v41 = vadd.f32 %v908_v36, %v324_v39  ;;  %v746_v43 = vpop.f32.mrf.mxu1 }
 0x102   :  { %v326_v42 = vpop.f32.mrf.mxu0  ;;  %v526_v45 = vadd.f32 %v746_v43, %v514_v38 }
 0x103   :  { %v700_v44 = vpack.c.bf16 %v519_v41, %v518_v40  ;;  %v395_v47 = vpop.f32.mrf.mxu1  ;;  %v521_v48 = vadd.f32 %v906_v35, %v326_v42 }
 0x104   :  { %v328_v46 = vpop.f32.mrf.mxu0  ;;  %v705_v50 = vpack.c.bf16 %v526_v45, %v526_v45  ;;  %v520_v51 = vadd.f32 %v514_v38, %v395_v47 }
 0x105   :  { %622 = vst [vmem:[#allocation8] sm:$0xff] %v700_v44  ;;  %v522_v49 = vadd.f32 %v908_v36, %v328_v46  ;;  %v747_v53 = vpop.f32.mrf.mxu1 }
 0x106   :  { %v332_v52 = vpop.f32.mrf.mxu0  ;;  %627 = vst [vmem:[#allocation8 + $0x20] sm:$0xf] %v705_v50  ;;  %v701_v55 = vpack.c.bf16 %v520_v51, %v520_v51  ;;  %v529_v56 = vadd.f32 %v747_v53, %v514_v38 }
 0x107   :  { %v702_v54 = vpack.c.bf16 %v522_v49, %v521_v48  ;;  %v398_v58 = vpop.f32.mrf.mxu1  ;;  %v524_v59 = vadd.f32 %v906_v35, %v332_v52 }
 0x108   :  { %v334_v57 = vpop.f32.mrf.mxu0  ;;  %623 = vst [vmem:[#allocation8 + $0x8] sm:$0xf] %v701_v55  ;;  %v707_v61 = vpack.c.bf16 %v529_v56, %v529_v56  ;;  %v523_v62 = vadd.f32 %v514_v38, %v398_v58 }
 0x109   :  { %624 = vst [vmem:[#allocation8 + $0xc] sm:$0xff] %v702_v54  ;;  %v525_v60 = vadd.f32 %v908_v36, %v334_v57  ;;  %v750_v0 = vpop.f32.mrf.mxu1 }
 0x10a   :  { %v336_v63 = vpop.f32.mrf.mxu0  ;;  %629 = vst [vmem:[#allocation8 + $0x2c] sm:$0xf] %v707_v61  ;;  %v703_v2 = vpack.c.bf16 %v523_v62, %v523_v62  ;;  %v538_v3 = vadd.f32 %v750_v0, %v514_v38 }
 0x10b   :  { %v704_v1 = vpack.c.bf16 %v525_v60, %v524_v59  ;;  %v411_v5 = vpop.f32.mrf.mxu1  ;;  %v527_v6 = vadd.f32 %v906_v35, %v336_v63 }
 0x10c   :  { %v338_v4 = vpop.f32.mrf.mxu0  ;;  %625 = vst [vmem:[#allocation8 + $0x14] sm:$0xf] %v703_v2  ;;  %v713_v8 = vpack.c.bf16 %v538_v3, %v538_v3  ;;  %v532_v9 = vadd.f32 %v514_v38, %v411_v5 }
 0x10d   :  { %626 = vst [vmem:[#allocation8 + $0x18] sm:$0xff] %v704_v1  ;;  %v528_v7 = vadd.f32 %v908_v36, %v338_v4  ;;  %v751_v11 = vpop.f32.mrf.mxu1 }
 0x10e   :  { %v342_v10 = vpop.f32.mrf.mxu0  ;;  %635 = vst [vmem:[#allocation8 + $0x50] sm:$0xf] %v713_v8  ;;  %v709_v13 = vpack.c.bf16 %v532_v9, %v532_v9  ;;  %v541_v14 = vadd.f32 %v751_v11, %v514_v38 }
 0x10f   :  { %v706_v12 = vpack.c.bf16 %v528_v7, %v527_v6  ;;  %v414_v16 = vpop.f32.mrf.mxu1  ;;  %v530_v17 = vadd.f32 %v906_v35, %v342_v10 }
 0x110   :  { %v344_v15 = vpop.f32.mrf.mxu0  ;;  %631 = vst [vmem:[#allocation8 + $0x38] sm:$0xf] %v709_v13  ;;  %v715_v19 = vpack.c.bf16 %v541_v14, %v541_v14  ;;  %v535_v20 = vadd.f32 %v514_v38, %v414_v16 }
 0x111   :  { %628 = vst [vmem:[#allocation8 + $0x24] sm:$0xff] %v706_v12  ;;  %v531_v18 = vadd.f32 %v908_v36, %v344_v15 }
 0x112   :  { %v346_v21 = vpop.f32.mrf.mxu0  ;;  %637 = vst [vmem:[#allocation8 + $0x5c] sm:$0xf] %v715_v19  ;;  %v711_v23 = vpack.c.bf16 %v535_v20, %v535_v20 }
 0x113   :  { %v708_v22 = vpack.c.bf16 %v531_v18, %v530_v17  ;;  %v533_v25 = vadd.f32 %v906_v35, %v346_v21 }
 0x114   :  { %v348_v24 = vpop.f32.mrf.mxu0  ;;  %633 = vst [vmem:[#allocation8 + $0x44] sm:$0xf] %v711_v23 }
 0x115   :  { %630 = vst [vmem:[#allocation8 + $0x30] sm:$0xff] %v708_v22  ;;  %v534_v26 = vadd.f32 %v908_v36, %v348_v24 }
 0x116   :  { %v352_v27 = vpop.f32.mrf.mxu0 }
 0x117   :  { %v710_v28 = vpack.c.bf16 %v534_v26, %v533_v25  ;;  %v536_v30 = vadd.f32 %v906_v35, %v352_v27 }
 0x118   :  { %v354_v29 = vpop.f32.mrf.mxu0 }
 0x119   :  { %632 = vst [vmem:[#allocation8 + $0x3c] sm:$0xff] %v710_v28  ;;  %v537_v31 = vadd.f32 %v908_v36, %v354_v29 }
 0x11a   :  { %v356_v32 = vpop.f32.mrf.mxu0 }
 0x11b   :  { %v712_v33 = vpack.c.bf16 %v537_v31, %v536_v30  ;;  %v539_v37 = vadd.f32 %v906_v35, %v356_v32 }
 0x11c   :  { %v358_v34 = vpop.f32.mrf.mxu0 }
 0x11d   :  { %634 = vst [vmem:[#allocation8 + $0x48] sm:$0xff] %v712_v33  ;;  %v540_v38 = vadd.f32 %v908_v36, %v358_v34 }
 0x11f   :  { %v714_v39 = vpack.c.bf16 %v540_v38, %v539_v37 }
 0x121   :  { %636 = vst [vmem:[#allocation8 + $0x54] sm:$0xff] %v714_v39 }
 0x122   :  { %847 = shalt.err (!%p844_p0)
}
 0x123   :  { %649 = dma.vmem_to_hbm [thread:$0]  %s644_s26, 1536, %s935_s3, [#allocation5], %s866_s22, %s866_s22, %s867_s23  }
 0x124   :  { %860 = dma.done.wait [#allocation5], 1536  }
 0x125   :  { %861 = vsyncadd [#allocation5], 4294965760 }
 0x126   :  { %653 = vsyncpa [#allocation4], 1 }
 0x127   :  { %654 = vsyncpa [#allocation7], 1 }
 0x128   :  { %655 = vsyncpa [#allocation5], 1 }

</bundles_post_ra>
